<compile_context>
chip_gen: v6e
topology: v6e:2x2x1
jax: 0.10.0
libtpu: 0.0.40
codegen_flags: <defaults>
</compile_context>

<pallas_src>
import functools

import jax
import jax.numpy as jnp
from jax.experimental import pallas as pl
from jax.experimental.pallas import tpu as pltpu


def _round_up(v, m):
    return (v + m - 1) // m * m


def _moe_kernel(x_ref, w_ref, o_ref, acc_ref, *, num_experts, e_pad, chunk):
    """One (batch-tile i, output-chunk n, K-tile k) grid step.

    x_ref:   (TB, TK)            input tile (ones column folded into K range)
    w_ref:   (TK, E*C + E_p)     fused [expert-chunk | gate] weight K-slab
    o_ref:   (TB, C)             output column chunk (written on last K step)
    acc_ref: (TB, E*C + E_p) f32 fused accumulator (expert outputs + gate logits)
    """
    k = pl.program_id(2)
    nk = pl.num_programs(2)

    @pl.when(k == 0)
    def _init():
        acc_ref[...] = jnp.zeros_like(acc_ref)

    # Single wide MXU matmul per step (gate columns are fused into w_ref).
    acc_ref[...] += jnp.dot(x_ref[...], w_ref[...],
                            preferred_element_type=jnp.float32)

    @pl.when(k == nk - 1)
    def _finalize():
        acc = acc_ref[...]
        nf = num_experts * chunk
        # Softmax over experts (padded expert columns carry -1e30 logits -> 0).
        logits = acc[:, nf:nf + e_pad]                      # (TB, E_p) f32
        m = jnp.max(logits, axis=-1, keepdims=True)
        p = jnp.exp(logits - m)
        weights = p / jnp.sum(p, axis=-1, keepdims=True)    # exact, once per tile

        out = jnp.zeros((acc.shape[0], chunk), jnp.float32)
        for e in range(num_experts):                        # small static unroll
            out = out + weights[:, e:e + 1] * acc[:, e * chunk:(e + 1) * chunk]
        o_ref[...] = out.astype(o_ref.dtype)


def make_basic_moe(gate_w, gate_b, expert_w, expert_b, *,
                   compute_dtype=None, max_tb=128, max_tk=1024):
    """Packs parameters once and returns a jitted forward `f(x) -> (B, Fout)`.

    gate_w: (Fin, E); gate_b: (E,) or (1, E); expert_w: (E, Fin, Fout);
    expert_b: (E, Fout).
    """
    E, Fin, Fout = expert_w.shape
    assert gate_w.shape == (Fin, E), gate_w.shape
    gate_b = jnp.reshape(gate_b, (E,))
    expert_b = jnp.reshape(expert_b, (E, Fout))

    dt = jnp.dtype(compute_dtype) if compute_dtype is not None else jnp.dtype(gate_w.dtype)
    if dt == jnp.dtype(jnp.float16):
        # -1e30 softmax sentinel would overflow fp16.
        raise ValueError("float16 compute dtype is not supported; use f32/bf16")
    isz = jnp.dtype(dt).itemsize

    # ---- geometry ------------------------------------------------------------
    Fout_p = _round_up(Fout, 128)
    E_p = _round_up(E, 128)
    Fin_aug = Fin + 1                         # +1 ones-column for bias folding

    # VMEM budget: 3/4 of physical (≈96 MiB on v5e/v6e, ≈48 MiB on v7x).
    try:
        phys_vmem = int(pltpu.get_tpu_info().vmem_capacity_bytes)
    except Exception:
        phys_vmem = 64 * 1024 * 1024
    vmem_limit = min(phys_vmem * 3 // 4, 112 * 1024 * 1024)

    def _fits(tk, c):
        sw = E * c + E_p
        need = (2 * max_tb * tk * isz          # x double buffer
                + 2 * tk * sw * isz            # weight slab double buffer
                + max_tb * sw * 4              # f32 accumulator
                + 2 * max_tb * c * 4)          # output double buffer
        return need <= int(vmem_limit * 0.8)

    # K tile: a 256-multiple (full MXU depth on v6e/v7x); Fin padded to TK mult.
    TK = min(max_tk, _round_up(Fin_aug, 256))
    # Output chunk C: largest 128-multiple divisor of Fout_p fitting the budget.
    C = Fout_p
    while C > 128 and not _fits(TK, C):
        c = C - 128
        while c > 128 and Fout_p % c != 0:
            c -= 128
        C = c
    while TK > 256 and not _fits(TK, C):
        TK = max(256, _round_up(TK // 2, 128))

    Fin_p = _round_up(Fin_aug, TK)
    nk = Fin_p // TK
    nc = Fout_p // C
    SW = E * C + E_p                          # fused slab width per output chunk

    # ---- one-time parameter packing (hoisted out of the forward pass) --------
    # Expert weights with bias row `Fin`, chunked over output columns:
    #   (Fin_p, nc, E*C)  where chunk n holds every expert's columns [n*C,(n+1)*C).
    w = jnp.zeros((Fin_p, E, Fout_p), dt)
    w = w.at[:Fin, :, :Fout].set(jnp.transpose(expert_w, (1, 0, 2)).astype(dt))
    w = w.at[Fin, :, :Fout].set(expert_b.astype(dt))
    w = w.reshape(Fin_p, E, nc, C).transpose(0, 2, 1, 3).reshape(Fin_p, nc, E * C)

    # Gate columns (bias row folded in; padded expert columns get -1e30 so their
    # softmax weight is exactly 0), replicated per output chunk so every grid-n
    # tile is self-contained (chunks independent -> "parallel" axis).
    g = jnp.zeros((Fin_p, E_p), dt)
    g = g.at[:Fin, :E].set(gate_w.astype(dt))
    g = g.at[Fin, :E].set(gate_b.astype(dt))
    g = g.at[Fin, E:].set(jnp.asarray(-1e30, dt))
    g = jnp.broadcast_to(g[:, None, :], (Fin_p, nc, E_p))

    packed = jnp.concatenate([w, g], axis=2).reshape(Fin_p, nc * SW)
    packed = jax.device_put(packed)

    kernel = functools.partial(_moe_kernel, num_experts=E, e_pad=E_p, chunk=C)
    sublane_pack = {4: 8, 2: 16, 1: 32}.get(isz, 8)

    @jax.jit
    def forward(x):
        B, fin = x.shape
        assert fin == Fin, (fin, Fin)
        out_dtype = x.dtype

        TB = min(max_tb, _round_up(B, sublane_pack))
        B_p = _round_up(B, TB)
        nb = B_p // TB

        # Per-call work: only x needs padding / ones-column augmentation.
        x_p = jnp.zeros((B_p, Fin_p), dt)
        x_p = x_p.at[:B, :Fin].set(x.astype(dt))
        x_p = x_p.at[:, Fin].set(jnp.asarray(1.0, dt))

        cost = pl.CostEstimate(
            flops=2 * B_p * Fin_p * (nc * SW),
            transcendentals=B_p * nc * E_p,
            bytes_accessed=(nc * B_p * Fin_p * isz            # x re-read per N chunk
                            + nb * Fin_p * nc * SW * isz      # weights re-read per batch tile
                            + B_p * Fout_p * jnp.dtype(out_dtype).itemsize),
        )

        out_p = pl.pallas_call(
            kernel,
            out_shape=jax.ShapeDtypeStruct((B_p, Fout_p), out_dtype),
            grid_spec=pltpu.PrefetchScalarGridSpec(
                num_scalar_prefetch=0,
                grid=(nb, nc, nk),                               # reduction axis last
                in_specs=[
                    pl.BlockSpec((TB, TK), lambda i, n, k: (i, k)),   # x tile
                    pl.BlockSpec((TK, SW), lambda i, n, k: (k, n)),   # fused weight slab
                ],
                out_specs=pl.BlockSpec((TB, C), lambda i, n, k: (i, n)),
                scratch_shapes=[pltpu.VMEM((TB, SW), jnp.float32)],   # fused f32 acc
            ),
            compiler_params=pltpu.CompilerParams(
                dimension_semantics=("parallel", "parallel", "arbitrary"),
                vmem_limit_bytes=int(vmem_limit),
            ),
            cost_estimate=cost,
        )(x_p, packed)

        return out_p[:B, :Fout]

    return forward


def basic_moe_ref(x, gate_w, gate_b, expert_w, expert_b):
    """Pure-JAX reference mirroring the PyTorch forward."""
    logits = x @ gate_w + jnp.reshape(gate_b, (-1,))                      # (B, E)
    wts = jax.nn.softmax(logits, axis=1)                                  # (B, E)
    expert_out = jnp.einsum("bi,eio->beo", x, expert_w) + expert_b[None]  # (B, E, Fout)
    return jnp.einsum("be,beo->bo", wts, expert_out)                      # (B, Fout)


if __name__ == "__main__":
    # Shapes consistent with BasicMOE(feature_in, feature_out, num_experts).
    B, FEATURE_IN, FEATURE_OUT, NUM_EXPERTS = 8, 32, 64, 4

    key = jax.random.PRNGKey(0)
    kx, kgw, kgb, kew, keb = jax.random.split(key, 5)

    x = jax.random.normal(kx, (B, FEATURE_IN), dtype=jnp.float32)
    gate_w = jax.random.normal(kgw, (FEATURE_IN, NUM_EXPERTS), jnp.float32) * (FEATURE_IN ** -0.5)
    gate_b = jax.random.normal(kgb, (1, NUM_EXPERTS), jnp.float32) * 0.01
    expert_w = jax.random.normal(kew, (NUM_EXPERTS, FEATURE_IN, FEATURE_OUT), jnp.float32) * (FEATURE_IN ** -0.5)
    expert_b = jax.random.normal(keb, (NUM_EXPERTS, FEATURE_OUT), jnp.float32) * 0.01

    moe = make_basic_moe(gate_w, gate_b, expert_w, expert_b)   # packs params once
    out = jax.block_until_ready(moe(x))

    ref = basic_moe_ref(x, gate_w, gate_b, expert_w, expert_b)
    assert out.shape == (B, FEATURE_OUT), out.shape
    assert jnp.allclose(out, ref, atol=2e-3, rtol=2e-3), float(jnp.max(jnp.abs(out - ref)))

    # Second, non-128-aligned configuration to exercise the padding paths.
    B2, FI2, FO2, E2 = 5, 200, 192, 3
    k2 = jax.random.split(jax.random.PRNGKey(1), 5)
    x2 = jax.random.normal(k2[0], (B2, FI2), jnp.float32)
    gw2 = jax.random.normal(k2[1], (FI2, E2), jnp.float32) * (FI2 ** -0.5)
    gb2 = jax.random.normal(k2[2], (1, E2), jnp.float32) * 0.01
    ew2 = jax.random.normal(k2[3], (E2, FI2, FO2), jnp.float32) * (FI2 ** -0.5)
    eb2 = jax.random.normal(k2[4], (E2, FO2), jnp.float32) * 0.01
    out2 = jax.block_until_ready(make_basic_moe(gw2, gb2, ew2, eb2)(x2))
    ref2 = basic_moe_ref(x2, gw2, gb2, ew2, eb2)
    assert out2.shape == (B2, FO2), out2.shape
    assert jnp.allclose(out2, ref2, atol=2e-3, rtol=2e-3), float(jnp.max(jnp.abs(out2 - ref2)))

    print("KERNEL_OK")
</pallas_src>

<mosaic_0001>
module attributes {stable_mosaic.version = 11 : i64} {
  func.func @_moe_kernel(%arg0: i32, %arg1: i32, %arg2: i32, %arg3: memref<8x256xf32, #tpu.memory_space<vmem>>, %arg4: memref<256x640xf32, #tpu.memory_space<vmem>>, %arg5: memref<8x128xf32, #tpu.memory_space<vmem>>, %arg6: memref<8x640xf32, #tpu.memory_space<vmem>>) attributes {dimension_semantics = [#tpu.dimension_semantics<parallel>, #tpu.dimension_semantics<parallel>, #tpu.dimension_semantics<arbitrary>], iteration_bounds = array<i64: 1, 1, 1>, scalar_prefetch = 0 : i64, scratch_operands = 1 : i64, tpu.core_type = #tpu.core_type<tc>, window_params = [{transform_indices = @transform_0, window_bounds = array<i64: 8, 256>}, {transform_indices = @transform_1, window_bounds = array<i64: 256, 640>}, {transform_indices = @transform_2, window_bounds = array<i64: 8, 128>}]} {
    %c0_i32 = arith.constant 0 : i32
    %0 = arith.cmpi eq, %arg2, %c0_i32 : i32
    %1 = arith.extui %0 : i1 to i32
    %c0_i32_0 = arith.constant 0 : i32
    %2 = arith.cmpi ne, %1, %c0_i32_0 : i32
    scf.if %2 {
      %cst_10 = arith.constant 0.000000e+00 : f32
      %12 = vector.broadcast %cst_10 : f32 to vector<8x640xf32>
      %c0_11 = arith.constant 0 : index
      %c0_12 = arith.constant 0 : index
      %13 = vector.load %arg6[%c0_11, %c0_12] : memref<8x640xf32, #tpu.memory_space<vmem>>, vector<8x640xf32>
      tpu.vector_store %arg6[%c0_11, %c0_12], %12 {strides = array<i32>} : memref<8x640xf32, #tpu.memory_space<vmem>>, vector<8x640xf32>,
    } else {
    }
    %c0 = arith.constant 0 : index
    %c0_1 = arith.constant 0 : index
    %3 = vector.load %arg6[%c0, %c0_1] : memref<8x640xf32, #tpu.memory_space<vmem>>, vector<8x640xf32>
    %c0_2 = arith.constant 0 : index
    %c0_3 = arith.constant 0 : index
    %4 = vector.load %arg3[%c0_2, %c0_3] : memref<8x256xf32, #tpu.memory_space<vmem>>, vector<8x256xf32>
    %c0_4 = arith.constant 0 : index
    %c0_5 = arith.constant 0 : index
    %5 = vector.load %arg4[%c0_4, %c0_5] : memref<256x640xf32, #tpu.memory_space<vmem>>, vector<256x640xf32>
    %cst = arith.constant dense<0.000000e+00> : vector<8x640xf32>
    %6 = tpu.matmul %4, %5, %cst {dimension_numbers = #tpu.dot_dimension_numbers<[1], [0], [0], [1], [0, 0, 1, 1], [], []>} : vector<8x256xf32>, vector<256x640xf32>, vector<8x640xf32> -> vector<8x640xf32>
    %7 = arith.addf %3, %6 : vector<8x640xf32>
    %c0_6 = arith.constant 0 : index
    %c0_7 = arith.constant 0 : index
    %8 = vector.load %arg6[%c0_6, %c0_7] : memref<8x640xf32, #tpu.memory_space<vmem>>, vector<8x640xf32>
    tpu.vector_store %arg6[%c0_6, %c0_7], %7 {strides = array<i32>} : memref<8x640xf32, #tpu.memory_space<vmem>>, vector<8x640xf32>,
    %c0_i32_8 = arith.constant 0 : i32
    %9 = arith.cmpi eq, %arg2, %c0_i32_8 : i32
    %10 = arith.extui %9 : i1 to i32
    %c0_i32_9 = arith.constant 0 : i32
    %11 = arith.cmpi ne, %10, %c0_i32_9 : i32
    scf.if %11 {
      %c0_10 = arith.constant 0 : index
      %c0_11 = arith.constant 0 : index
      %12 = vector.load %arg6[%c0_10, %c0_11] : memref<8x640xf32, #tpu.memory_space<vmem>>, vector<8x640xf32>
      %13 = vector.extract_strided_slice %12 {offsets = [0, 512], sizes = [8, 128], strides = [1, 1]} : vector<8x640xf32> to vector<8x128xf32>
      %cst_12 = arith.constant dense<0xFF800000> : vector<8xf32>
      %14 = vector.multi_reduction <maximumf>, %13, %cst_12 [1] : vector<8x128xf32> to vector<8xf32>
      %15 = vector.shape_cast %14 : vector<8xf32> to vector<8x1xf32>
      %16 = vector.broadcast %15 : vector<8x1xf32> to vector<8x128xf32>
      %17 = arith.subf %13, %16 : vector<8x128xf32>
      %18 = math.exp %17 : vector<8x128xf32>
      %cst_13 = arith.constant dense<0.000000e+00> : vector<8xf32>
      %19 = vector.multi_reduction <add>, %18, %cst_13 [1] : vector<8x128xf32> to vector<8xf32>
      %20 = vector.shape_cast %19 : vector<8xf32> to vector<8x1xf32>
      %21 = vector.broadcast %20 : vector<8x1xf32> to vector<8x128xf32>
      %22 = arith.divf %18, %21 : vector<8x128xf32>
      %cst_14 = arith.constant 0.000000e+00 : f32
      %23 = vector.broadcast %cst_14 : f32 to vector<8x128xf32>
      %24 = vector.extract_strided_slice %22 {offsets = [0, 0], sizes = [8, 1], strides = [1, 1]} : vector<8x128xf32> to vector<8x1xf32>
      %25 = vector.extract_strided_slice %12 {offsets = [0, 0], sizes = [8, 128], strides = [1, 1]} : vector<8x640xf32> to vector<8x128xf32>
      %26 = vector.broadcast %24 : vector<8x1xf32> to vector<8x128xf32>
      %27 = arith.mulf %26, %25 : vector<8x128xf32>
      %28 = arith.addf %23, %27 : vector<8x128xf32>
      %29 = vector.extract_strided_slice %22 {offsets = [0, 1], sizes = [8, 1], strides = [1, 1]} : vector<8x128xf32> to vector<8x1xf32>
      %30 = vector.extract_strided_slice %12 {offsets = [0, 128], sizes = [8, 128], strides = [1, 1]} : vector<8x640xf32> to vector<8x128xf32>
      %31 = vector.broadcast %29 : vector<8x1xf32> to vector<8x128xf32>
      %32 = arith.mulf %31, %30 : vector<8x128xf32>
      %33 = arith.addf %28, %32 : vector<8x128xf32>
      %34 = vector.extract_strided_slice %22 {offsets = [0, 2], sizes = [8, 1], strides = [1, 1]} : vector<8x128xf32> to vector<8x1xf32>
      %35 = vector.extract_strided_slice %12 {offsets = [0, 256], sizes = [8, 128], strides = [1, 1]} : vector<8x640xf32> to vector<8x128xf32>
      %36 = vector.broadcast %34 : vector<8x1xf32> to vector<8x128xf32>
      %37 = arith.mulf %36, %35 : vector<8x128xf32>
      %38 = arith.addf %33, %37 : vector<8x128xf32>
      %39 = vector.extract_strided_slice %22 {offsets = [0, 3], sizes = [8, 1], strides = [1, 1]} : vector<8x128xf32> to vector<8x1xf32>
      %40 = vector.extract_strided_slice %12 {offsets = [0, 384], sizes = [8, 128], strides = [1, 1]} : vector<8x640xf32> to vector<8x128xf32>
      %41 = vector.broadcast %39 : vector<8x1xf32> to vector<8x128xf32>
      %42 = arith.mulf %41, %40 : vector<8x128xf32>
      %43 = arith.addf %38, %42 : vector<8x128xf32>
      %c0_15 = arith.constant 0 : index
      %c0_16 = arith.constant 0 : index
      %44 = vector.load %arg5[%c0_15, %c0_16] : memref<8x128xf32, #tpu.memory_space<vmem>>, vector<8x128xf32>
      tpu.vector_store %arg5[%c0_15, %c0_16], %43 {strides = array<i32>} : memref<8x128xf32, #tpu.memory_space<vmem>>, vector<8x128xf32>,
    } else {
    }
    return
  }
  func.func @transform_0(%arg0: i32, %arg1: i32, %arg2: i32) -> (i32, i32) {
    %c0_i32 = arith.constant 0 : i32
    return %arg0, %arg2 : i32, i32
  }
  func.func @transform_1(%arg0: i32, %arg1: i32, %arg2: i32) -> (i32, i32) {
    %c0_i32 = arith.constant 0 : i32
    return %arg2, %arg1 : i32, i32
  }
  func.func @transform_2(%arg0: i32, %arg1: i32, %arg2: i32) -> (i32, i32) {
    %c0_i32 = arith.constant 0 : i32
    return %arg0, %arg1 : i32, i32
  }
}

</mosaic_0001>

<bundles_post_ra>
// kernel: forward.1
= control target key start
LH: loop header
LB: loop body
LE: loop exit
PB: predicated region body
PF: predicated region fallthrough
CT: control target
= control target key end

     0   :  { %7 = vsyncpa [#allocation4], 0  ;;  %s633_s0 = inlined_call_operand.vmem [shape: f32[8,256], index: 0, kind: input, shape index: {}]   ;;  %s634_s1 = inlined_call_operand.hbm [shape: f32[256,640], index: 1, kind: input, shape index: {}]   ;;  %s635_s2 = inlined_call_operand.hbm [shape: f32[8,128], index: 2, kind: output, shape index: {}]  }
   0x1   :  { %8 = vsyncpa [#allocation5], 0  ;;  %s578_s9 = smov [#allocation3]  }
   0x2   :  { %s16_s10 = sshll.u32 %s578_s9, 4  ;;  %s17_s10 = int_to_ptr.vmem [resolvable:$true] %s16_s10 }
   0x3   :  { %s542_s11 = scalar_lea.vmem %s17_s10, 20480  ;;  %p547_p1 = scmp.lt.s32.totalorder %s17_s10, %s17_s10 }
   0x4   :  { %p543_p0 = scmp.ne.s32.totalorder %s17_s10, %s542_s11  ;;  %p548_p2 = scmp.lt.s32.totalorder %s542_s11, %s542_s11 }
   0x6   :  { %p549_p3 = por %p548_p2, %p547_p1 }
   0x8   :  { %p550_p4 = pnand %p549_p3, %p543_p0 }
   0xa   :  { %553 = shalt.err (!%p550_p4)
}
   0xb   :  { %s579_s12 = smov 640   ;;  %s580_s13 = smov 40  }
   0xc   :  { %22 = dma.hbm_to_vmem [thread:$0]  %s634_s1, 20480, %s17_s10, [#allocation4], %s579_s12, %s579_s12, %s580_s13  }
   0xd   :  { %574 = dma.done.wait [#allocation4], 20480  }
   0xe   :  { %575 = vsyncadd [#allocation4], 4294946816  ;;  %v118_v0 = vld [vmem:[#allocation3 + $0x260] sm:$0xff]  ;;  %v117_v1 = vld [vmem:[#allocation3 + $0x258] sm:$0xff] }
   0xf   :  { %v113_v2 = vld [vmem:[#allocation3 + $0x238] sm:$0xff]  ;;  %202 = vmatprep.subr.mxu0 %v118_v0  ;;  %v112_v3 = vld [vmem:[#allocation3 + $0x230] sm:$0xff]  ;;  %v107_v5 = vld [vmem:[#allocation3 + $0x208] sm:$0xff] }
  0x10   :  { %203 = vmatpush1.msra.mxu0 %v117_v1  ;;  %v108_v4 = vld [vmem:[#allocation3 + $0x210] sm:$0xff]  ;;  %v103_v6 = vld [vmem:[#allocation3 + $0x1e8] sm:$0xff]  ;;  %v102_v7 = vld [vmem:[#allocation3 + $0x1e0] sm:$0xff] }
  0x11   :  { %204 = vmatprep.subr.mxu0 %v113_v2  ;;  %v98_v8 = vld [vmem:[#allocation3 + $0x1c0] sm:$0xff]  ;;  %v97_v9 = vld [vmem:[#allocation3 + $0x1b8] sm:$0xff]  ;;  %v92_v11 = vld [vmem:[#allocation3 + $0x190] sm:$0xff] }
  0x12   :  { %205 = vmatpush1.msra.mxu0 %v112_v3  ;;  %v93_v10 = vld [vmem:[#allocation3 + $0x198] sm:$0xff]  ;;  %v88_v12 = vld [vmem:[#allocation3 + $0x170] sm:$0xff]  ;;  %v87_v13 = vld [vmem:[#allocation3 + $0x168] sm:$0xff] }
  0x13   :  { %206 = vmatprep.subr.mxu0 %v108_v4  ;;  %v83_v14 = vld [vmem:[#allocation3 + $0x148] sm:$0xff]  ;;  %v82_v15 = vld [vmem:[#allocation3 + $0x140] sm:$0xff]  ;;  %v77_v17 = vld [vmem:[#allocation3 + $0x118] sm:$0xff] }
  0x14   :  { %207 = vmatpush1.msra.mxu0 %v107_v5  ;;  %v78_v16 = vld [vmem:[#allocation3 + $0x120] sm:$0xff]  ;;  %v73_v18 = vld [vmem:[#allocation3 + $0xf8] sm:$0xff]  ;;  %v72_v19 = vld [vmem:[#allocation3 + $0xf0] sm:$0xff] }
  0x15   :  { %208 = vmatprep.subr.mxu0 %v103_v6  ;;  %v68_v20 = vld [vmem:[#allocation3 + $0xd0] sm:$0xff]  ;;  %v67_v21 = vld [vmem:[#allocation3 + $0xc8] sm:$0xff]  ;;  %v62_v23 = vld [vmem:[#allocation3 + $0xa0] sm:$0xff] }
  0x16   :  { %209 = vmatpush1.msra.mxu0 %v102_v7  ;;  %v63_v22 = vld [vmem:[#allocation3 + $0xa8] sm:$0xff]  ;;  %v58_v25 = vld [vmem:[#allocation3 + $0x80] sm:$0xff]  ;;  %v57_v26 = vld [vmem:[#allocation3 + $0x78] sm:$0xff] }
  0x17   :  { %210 = vmatprep.subr.mxu0 %v98_v8  ;;  %v607_v24 = vld [vmem:[%s633_s0 + $0x8] sm:$0xff]  ;;  %v53_v27 = vld [vmem:[#allocation3 + $0x58] sm:$0xff]  ;;  %v52_v28 = vld [vmem:[#allocation3 + $0x50] sm:$0xff] }
  0x18   :  { %211 = vmatpush1.msra.mxu0 %v97_v9  ;;  %266 = vmatprep.mubr.f32.mxu0 %v607_v24  ;;  %v48_v29 = vld [vmem:[#allocation3 + $0x30] sm:$0xff]  ;;  %v47_v30 = vld [vmem:[#allocation3 + $0x28] sm:$0xff]  ;;  %v42_v32 = vld [vmem:[#allocation3] sm:$0xff] }
  0x19   :  { %212 = vmatprep.subr.mxu0 %v93_v10  ;;  %337 = vmatprep.mubr.f32.mxu1 %v607_v24  ;;  %v43_v31 = vld [vmem:[#allocation3 + $0x8] sm:$0xff]  ;;  %v198_v33 = vld [vmem:[#allocation3 + $0x4e0] sm:$0xff]  ;;  %v197_v34 = vld [vmem:[#allocation3 + $0x4d8] sm:$0xff] }
  0x1a   :  { %213 = vmatpush1.msra.mxu0 %v92_v11  ;;  %v193_v35 = vld [vmem:[#allocation3 + $0x4b8] sm:$0xff]  ;;  %v192_v36 = vld [vmem:[#allocation3 + $0x4b0] sm:$0xff]  ;;  %v187_v38 = vld [vmem:[#allocation3 + $0x488] sm:$0xff] }
  0x1b   :  { %214 = vmatprep.subr.mxu0 %v88_v12  ;;  %v188_v37 = vld [vmem:[#allocation3 + $0x490] sm:$0xff]  ;;  %v183_v39 = vld [vmem:[#allocation3 + $0x468] sm:$0xff]  ;;  %v182_v40 = vld [vmem:[#allocation3 + $0x460] sm:$0xff] }
  0x1c   :  { %215 = vmatpush1.msra.mxu0 %v87_v13  ;;  %v178_v41 = vld [vmem:[#allocation3 + $0x440] sm:$0xff]  ;;  %v177_v42 = vld [vmem:[#allocation3 + $0x438] sm:$0xff]  ;;  %v172_v44 = vld [vmem:[#allocation3 + $0x410] sm:$0xff] }
  0x1d   :  { %216 = vmatprep.subr.mxu0 %v83_v14  ;;  %v173_v43 = vld [vmem:[#allocation3 + $0x418] sm:$0xff]  ;;  %v168_v45 = vld [vmem:[#allocation3 + $0x3f0] sm:$0xff]  ;;  %v167_v46 = vld [vmem:[#allocation3 + $0x3e8] sm:$0xff] }
  0x1e   :  { %217 = vmatpush1.msra.mxu0 %v82_v15  ;;  %v163_v47 = vld [vmem:[#allocation3 + $0x3c8] sm:$0xff]  ;;  %v162_v48 = vld [vmem:[#allocation3 + $0x3c0] sm:$0xff]  ;;  %v157_v50 = vld [vmem:[#allocation3 + $0x398] sm:$0xff] }
  0x1f   :  { %218 = vmatprep.subr.mxu0 %v78_v16  ;;  %v158_v49 = vld [vmem:[#allocation3 + $0x3a0] sm:$0xff]  ;;  %v153_v51 = vld [vmem:[#allocation3 + $0x378] sm:$0xff]  ;;  %v152_v52 = vld [vmem:[#allocation3 + $0x370] sm:$0xff] }
  0x20   :  { %219 = vmatpush1.msra.mxu0 %v77_v17  ;;  %v148_v53 = vld [vmem:[#allocation3 + $0x350] sm:$0xff]  ;;  %v147_v54 = vld [vmem:[#allocation3 + $0x348] sm:$0xff]  ;;  %v142_v56 = vld [vmem:[#allocation3 + $0x320] sm:$0xff] }
  0x21   :  { %220 = vmatprep.subr.mxu0 %v73_v18  ;;  %v143_v55 = vld [vmem:[#allocation3 + $0x328] sm:$0xff]  ;;  %v138_v57 = vld [vmem:[#allocation3 + $0x300] sm:$0xff]  ;;  %v137_v58 = vld [vmem:[#allocation3 + $0x2f8] sm:$0xff] }
  0x22   :  { %221 = vmatpush1.msra.mxu0 %v72_v19  ;;  %v133_v59 = vld [vmem:[#allocation3 + $0x2d8] sm:$0xff]  ;;  %v132_v60 = vld [vmem:[#allocation3 + $0x2d0] sm:$0xff]  ;;  %v127_v62 = vld [vmem:[#allocation3 + $0x2a8] sm:$0xff] }
  0x23   :  { %222 = vmatprep.subr.mxu0 %v68_v20  ;;  %v128_v61 = vld [vmem:[#allocation3 + $0x2b0] sm:$0xff]  ;;  %v123_v63 = vld [vmem:[#allocation3 + $0x288] sm:$0xff]  ;;  %v122_v0 = vld [vmem:[#allocation3 + $0x280] sm:$0xff] }
  0x24   :  { %223 = vmatpush1.msra.mxu0 %v67_v21  ;;  %v614_v1 = vld [vmem:[%s633_s0] sm:$0xff]  ;;  %v201_v2 = vld [vmem:[#allocation3 + $0x4f8] sm:$0xff]  ;;  %v196_v4 = vld [vmem:[#allocation3 + $0x4d0] sm:$0xff]  ;;  %s585_s0 = smov [#allocation6]  }
  0x25   :  { %224 = vmatprep.subr.mxu0 %v63_v22  ;;  %v121_v3 = vld [vmem:[#allocation3 + $0x278] sm:$0xff]  ;;  %v116_v5 = vld [vmem:[#allocation3 + $0x250] sm:$0xff]  ;;  %v191_v6 = vld [vmem:[#allocation3 + $0x4a8] sm:$0xff]  ;;  %s473_s19 = sshll.u32 %s585_s0, 4  ;;  %s474_s19 = int_to_ptr.vmem [resolvable:$true] %s473_s19 }
  0x26   :  { %225 = vmatpush1.msra.mxu0 %v62_v23  ;;  %v111_v7 = vld [vmem:[#allocation3 + $0x228] sm:$0xff]  ;;  %v186_v8 = vld [vmem:[#allocation3 + $0x480] sm:$0xff]  ;;  %v181_v10 = vld [vmem:[#allocation3 + $0x458] sm:$0xff]  ;;  %s554_s20 = scalar_lea.vmem %s474_s19, 128  ;;  %p559_p6 = scmp.lt.s32.totalorder %s474_s19, %s474_s19 }
  0x27   :  { %226 = vmatprep.subr.mxu0 %v58_v25  ;;  %v106_v9 = vld [vmem:[#allocation3 + $0x200] sm:$0xff]  ;;  %v101_v11 = vld [vmem:[#allocation3 + $0x1d8] sm:$0xff]  ;;  %v176_v12 = vld [vmem:[#allocation3 + $0x430] sm:$0xff]  ;;  %p555_p5 = scmp.ne.s32.totalorder %s474_s19, %s554_s20  ;;  %p560_p7 = scmp.lt.s32.totalorder %s554_s20, %s554_s20 }
  0x28   :  { %227 = vmatpush1.msra.mxu0 %v57_v26  ;;  %v96_v13 = vld [vmem:[#allocation3 + $0x1b0] sm:$0xff]  ;;  %v171_v14 = vld [vmem:[#allocation3 + $0x408] sm:$0xff]  ;;  %v166_v16 = vld [vmem:[#allocation3 + $0x3e0] sm:$0xff] }
  0x29   :  { %228 = vmatprep.subr.mxu0 %v53_v27  ;;  %v91_v15 = vld [vmem:[#allocation3 + $0x188] sm:$0xff]  ;;  %v86_v17 = vld [vmem:[#allocation3 + $0x160] sm:$0xff]  ;;  %v161_v18 = vld [vmem:[#allocation3 + $0x3b8] sm:$0xff]  ;;  %p561_p8 = por %p560_p7, %p559_p6 }
  0x2a   :  { %229 = vmatpush1.msra.mxu0 %v52_v28  ;;  %v81_v19 = vld [vmem:[#allocation3 + $0x138] sm:$0xff]  ;;  %v156_v20 = vld [vmem:[#allocation3 + $0x390] sm:$0xff]  ;;  %v151_v22 = vld [vmem:[#allocation3 + $0x368] sm:$0xff] }
  0x2b   :  { %230 = vmatprep.subr.mxu0 %v48_v29  ;;  %v76_v21 = vld [vmem:[#allocation3 + $0x110] sm:$0xff]  ;;  %v71_v23 = vld [vmem:[#allocation3 + $0xe8] sm:$0xff]  ;;  %v66_v25 = vld [vmem:[#allocation3 + $0xc0] sm:$0xff]  ;;  %p562_p9 = pnand %p561_p8, %p555_p5 }
  0x2c   :  { %231 = vmatpush1.msra.mxu0 %v47_v30  ;;  %v141_v26 = vld [vmem:[#allocation3 + $0x318] sm:$0xff]  ;;  %v136_v28 = vld [vmem:[#allocation3 + $0x2f0] sm:$0xff]  ;;  %v131_v30 = vld [vmem:[#allocation3 + $0x2c8] sm:$0xff] }
  0x2d   :  { %232 = vmatprep.subr.mxu0 %v43_v31  ;;  %v61_v27 = vld [vmem:[#allocation3 + $0x98] sm:$0xff]  ;;  %v56_v29 = vld [vmem:[#allocation3 + $0x70] sm:$0xff]  ;;  %v51_v31 = vld [vmem:[#allocation3 + $0x48] sm:$0xff] }
  0x2e   :  { %233 = vmatpush1.msra.mxu0 %v42_v32  ;;  %v126_v32 = vld [vmem:[#allocation3 + $0x2a0] sm:$0xff] }
  0x2f   :  { %234 = vmatprep.subr.mxu0 %v198_v33  ;;  %v46_v33 = vld [vmem:[#allocation3 + $0x20] sm:$0xff] }
  0x30   :  { %235 = vmatpush2.msra.mxu0 %v197_v34 }
  0x31   :  { %236 = vmatprep.subr.mxu0 %v193_v35 }
  0x32   :  { %237 = vmatpush2.msra.mxu0 %v192_v36 }
  0x33   :  { %238 = vmatprep.subr.mxu0 %v188_v37 }
  0x34   :  { %239 = vmatpush2.msra.mxu0 %v187_v38 }
  0x35   :  { %240 = vmatprep.subr.mxu0 %v183_v39  ;;  %v120_v39 = vld [vmem:[#allocation3 + $0x270] sm:$0xff] }
  0x36   :  { %241 = vmatpush2.msra.mxu0 %v182_v40  ;;  %v119_v40 = vld [vmem:[#allocation3 + $0x268] sm:$0xff]  ;;  %273 = vmatprep.subr.mxu1 %v120_v39  ;;  %v130_v39 = vld [vmem:[#allocation3 + $0x2c0] sm:$0xff] }
  0x37   :  { %242 = vmatprep.subr.mxu0 %v178_v41  ;;  %v115_v41 = vld [vmem:[#allocation3 + $0x248] sm:$0xff]  ;;  %274 = vmatpush1.msra.mxu1 %v119_v40  ;;  %v129_v40 = vld [vmem:[#allocation3 + $0x2b8] sm:$0xff] }
  0x38   :  { %243 = vmatpush2.msra.mxu0 %v177_v42  ;;  %v114_v42 = vld [vmem:[#allocation3 + $0x240] sm:$0xff]  ;;  %275 = vmatprep.subr.mxu1 %v115_v41  ;;  %v125_v41 = vld [vmem:[#allocation3 + $0x298] sm:$0xff] }
  0x39   :  { %244 = vmatprep.subr.mxu0 %v173_v43  ;;  %v110_v43 = vld [vmem:[#allocation3 + $0x220] sm:$0xff]  ;;  %276 = vmatpush1.msra.mxu1 %v114_v42  ;;  %v124_v42 = vld [vmem:[#allocation3 + $0x290] sm:$0xff] }
  0x3a   :  { %245 = vmatpush2.msra.mxu0 %v172_v44  ;;  %v109_v44 = vld [vmem:[#allocation3 + $0x218] sm:$0xff]  ;;  %277 = vmatprep.subr.mxu1 %v110_v43 }
  0x3b   :  { %246 = vmatprep.subr.mxu0 %v168_v45  ;;  %v105_v45 = vld [vmem:[#allocation3 + $0x1f8] sm:$0xff]  ;;  %278 = vmatpush1.msra.mxu1 %v109_v44 }
  0x3c   :  { %247 = vmatpush2.msra.mxu0 %v167_v46  ;;  %v104_v46 = vld [vmem:[#allocation3 + $0x1f0] sm:$0xff]  ;;  %279 = vmatprep.subr.mxu1 %v105_v45 }
  0x3d   :  { %248 = vmatprep.subr.mxu0 %v163_v47  ;;  %v100_v47 = vld [vmem:[#allocation3 + $0x1d0] sm:$0xff]  ;;  %280 = vmatpush1.msra.mxu1 %v104_v46 }
  0x3e   :  { %249 = vmatpush2.msra.mxu0 %v162_v48  ;;  %v99_v48 = vld [vmem:[#allocation3 + $0x1c8] sm:$0xff]  ;;  %281 = vmatprep.subr.mxu1 %v100_v47  ;;  %v581_v47 = vmov 2  }
  0x3f   :  { %250 = vmatprep.subr.mxu0 %v158_v49  ;;  %v95_v49 = vld [vmem:[#allocation3 + $0x1a8] sm:$0xff]  ;;  %282 = vmatpush1.msra.mxu1 %v99_v48  ;;  %v582_v48 = vmov 0  }
  0x40   :  { %251 = vmatpush2.msra.mxu0 %v157_v50  ;;  %v94_v50 = vld [vmem:[#allocation3 + $0x1a0] sm:$0xff]  ;;  %283 = vmatprep.subr.mxu1 %v95_v49 }
  0x41   :  { %252 = vmatprep.subr.mxu0 %v153_v51  ;;  %v90_v51 = vld [vmem:[#allocation3 + $0x180] sm:$0xff]  ;;  %284 = vmatpush1.msra.mxu1 %v94_v50 }
  0x42   :  { %253 = vmatpush2.msra.mxu0 %v152_v52  ;;  %v89_v52 = vld [vmem:[#allocation3 + $0x178] sm:$0xff]  ;;  %285 = vmatprep.subr.mxu1 %v90_v51 }
  0x43   :  { %254 = vmatprep.subr.mxu0 %v148_v53  ;;  %v85_v53 = vld [vmem:[#allocation3 + $0x158] sm:$0xff]  ;;  %286 = vmatpush1.msra.mxu1 %v89_v52  ;;  %v583_v52 = vmov 1  }
  0x44   :  { %255 = vmatpush2.msra.mxu0 %v147_v54  ;;  %v84_v54 = vld [vmem:[#allocation3 + $0x150] sm:$0xff]  ;;  %287 = vmatprep.subr.mxu1 %v85_v53 }
  0x45   :  { %256 = vmatprep.subr.mxu0 %v143_v55  ;;  %v80_v55 = vld [vmem:[#allocation3 + $0x130] sm:$0xff]  ;;  %288 = vmatpush1.msra.mxu1 %v84_v54 }
  0x46   :  { %257 = vmatpush2.msra.mxu0 %v142_v56  ;;  %v79_v56 = vld [vmem:[#allocation3 + $0x128] sm:$0xff]  ;;  %289 = vmatprep.subr.mxu1 %v80_v55 }
  0x47   :  { %258 = vmatprep.subr.mxu0 %v138_v57  ;;  %v75_v57 = vld [vmem:[#allocation3 + $0x108] sm:$0xff]  ;;  %290 = vmatpush1.msra.mxu1 %v79_v56 }
  0x48   :  { %259 = vmatpush2.msra.mxu0 %v137_v58  ;;  %v74_v58 = vld [vmem:[#allocation3 + $0x100] sm:$0xff]  ;;  %291 = vmatprep.subr.mxu1 %v75_v57 }
  0x49   :  { %260 = vmatprep.subr.mxu0 %v133_v59  ;;  %v70_v59 = vld [vmem:[#allocation3 + $0xe0] sm:$0xff]  ;;  %292 = vmatpush1.msra.mxu1 %v74_v58 }
  0x4a   :  { %261 = vmatpush2.msra.mxu0 %v132_v60  ;;  %v69_v60 = vld [vmem:[#allocation3 + $0xd8] sm:$0xff]  ;;  %293 = vmatprep.subr.mxu1 %v70_v59 }
  0x4b   :  { %262 = vmatprep.subr.mxu0 %v128_v61  ;;  %v65_v61 = vld [vmem:[#allocation3 + $0xb8] sm:$0xff]  ;;  %294 = vmatpush1.msra.mxu1 %v69_v60 }
  0x4c   :  { %263 = vmatpush2.msra.mxu0 %v127_v62  ;;  %v64_v62 = vld [vmem:[#allocation3 + $0xb0] sm:$0xff]  ;;  %295 = vmatprep.subr.mxu1 %v65_v61 }
  0x4d   :  { %264 = vmatprep.subr.mxu0 %v123_v63  ;;  %v60_v63 = vld [vmem:[#allocation3 + $0x90] sm:$0xff]  ;;  %296 = vmatpush1.msra.mxu1 %v64_v62 }
  0x4e   :  { %265 = vmatpush2.msra.mxu0 %v122_v0  ;;  %v59_v0 = vld [vmem:[#allocation3 + $0x88] sm:$0xff]  ;;  %297 = vmatprep.subr.mxu1 %v60_v63 }
  0x4f   :  { %267 = vmatmul.mubr.f32.vlgmr.msra.gmra.mxu0 %v614_v1  ;;  %482 = vmatprep.subr.mxu0 %v201_v2  ;;  %v55_v2 = vld [vmem:[#allocation3 + $0x68] sm:$0xff] }
  0x50   :  { %483 = vmatpush3.msra.mxu0 %v121_v3  ;;  %408 = vmatprep.mubr.f32.mxu0 %v607_v24  ;;  %v146_v24 = vld [vmem:[#allocation3 + $0x340] sm:$0xff] }
  0x51   :  { %484 = vmatprep.subr.mxu0 %v196_v4  ;;  %v54_v3 = vld [vmem:[#allocation3 + $0x60] sm:$0xff]  ;;  %298 = vmatpush1.msra.mxu1 %v59_v0 }
  0x52   :  { %485 = vmatpush3.msra.mxu0 %v116_v5  ;;  %v50_v4 = vld [vmem:[#allocation3 + $0x40] sm:$0xff]  ;;  %299 = vmatprep.subr.mxu1 %v55_v2  ;;  %v49_v5 = vld [vmem:[#allocation3 + $0x38] sm:$0xff] }
  0x53   :  { %486 = vmatprep.subr.mxu0 %v191_v6  ;;  %300 = vmatpush1.msra.mxu1 %v54_v3  ;;  %v45_v6 = vld [vmem:[#allocation3 + $0x18] sm:$0xff] }
  0x54   :  { %487 = vmatpush3.msra.mxu0 %v111_v7  ;;  %301 = vmatprep.subr.mxu1 %v50_v4  ;;  %v44_v7 = vld [vmem:[#allocation3 + $0x10] sm:$0xff] }
  0x55   :  { %488 = vmatprep.subr.mxu0 %v186_v8  ;;  %302 = vmatpush1.msra.mxu1 %v49_v5  ;;  %v200_v8 = vld [vmem:[#allocation3 + $0x4f0] sm:$0xff] }
  0x56   :  { %489 = vmatpush3.msra.mxu0 %v106_v9  ;;  %303 = vmatprep.subr.mxu1 %v45_v6  ;;  %v199_v9 = vld [vmem:[#allocation3 + $0x4e8] sm:$0xff] }
  0x57   :  { %490 = vmatprep.subr.mxu0 %v181_v10  ;;  %304 = vmatpush1.msra.mxu1 %v44_v7  ;;  %v195_v10 = vld [vmem:[#allocation3 + $0x4c8] sm:$0xff] }
  0x58   :  { %491 = vmatpush3.msra.mxu0 %v101_v11  ;;  %305 = vmatprep.subr.mxu1 %v200_v8  ;;  %v194_v11 = vld [vmem:[#allocation3 + $0x4c0] sm:$0xff] }
  0x59   :  { %492 = vmatprep.subr.mxu0 %v176_v12  ;;  %306 = vmatpush2.msra.mxu1 %v199_v9  ;;  %v190_v12 = vld [vmem:[#allocation3 + $0x4a0] sm:$0xff] }
  0x5a   :  { %493 = vmatpush3.msra.mxu0 %v96_v13  ;;  %307 = vmatprep.subr.mxu1 %v195_v10  ;;  %v189_v13 = vld [vmem:[#allocation3 + $0x498] sm:$0xff] }
  0x5b   :  { %494 = vmatprep.subr.mxu0 %v171_v14  ;;  %308 = vmatpush2.msra.mxu1 %v194_v11  ;;  %v185_v14 = vld [vmem:[#allocation3 + $0x478] sm:$0xff] }
  0x5c   :  { %495 = vmatpush3.msra.mxu0 %v91_v15  ;;  %309 = vmatprep.subr.mxu1 %v190_v12  ;;  %v184_v15 = vld [vmem:[#allocation3 + $0x470] sm:$0xff] }
  0x5d   :  { %496 = vmatprep.subr.mxu0 %v166_v16  ;;  %310 = vmatpush2.msra.mxu1 %v189_v13  ;;  %v180_v16 = vld [vmem:[#allocation3 + $0x450] sm:$0xff] }
  0x5e   :  { %497 = vmatpush3.msra.mxu0 %v86_v17  ;;  %311 = vmatprep.subr.mxu1 %v185_v14  ;;  %v179_v17 = vld [vmem:[#allocation3 + $0x448] sm:$0xff] }
  0x5f   :  { %498 = vmatprep.subr.mxu0 %v161_v18  ;;  %312 = vmatpush2.msra.mxu1 %v184_v15  ;;  %v175_v18 = vld [vmem:[#allocation3 + $0x428] sm:$0xff] }
  0x60   :  { %499 = vmatpush3.msra.mxu0 %v81_v19  ;;  %313 = vmatprep.subr.mxu1 %v180_v16  ;;  %v174_v19 = vld [vmem:[#allocation3 + $0x420] sm:$0xff] }
  0x61   :  { %500 = vmatprep.subr.mxu0 %v156_v20  ;;  %314 = vmatpush2.msra.mxu1 %v179_v17  ;;  %v170_v20 = vld [vmem:[#allocation3 + $0x400] sm:$0xff] }
  0x62   :  { %501 = vmatpush3.msra.mxu0 %v76_v21  ;;  %315 = vmatprep.subr.mxu1 %v175_v18  ;;  %v169_v21 = vld [vmem:[#allocation3 + $0x3f8] sm:$0xff] }
  0x63   :  { %502 = vmatprep.subr.mxu0 %v151_v22  ;;  %316 = vmatpush2.msra.mxu1 %v174_v19  ;;  %v165_v22 = vld [vmem:[#allocation3 + $0x3d8] sm:$0xff] }
  0x64   :  { %503 = vmatpush3.msra.mxu0 %v71_v23  ;;  %317 = vmatprep.subr.mxu1 %v170_v20  ;;  %v164_v23 = vld [vmem:[#allocation3 + $0x3d0] sm:$0xff] }
  0x65   :  { %504 = vmatprep.subr.mxu0 %v146_v24  ;;  %318 = vmatpush2.msra.mxu1 %v169_v21  ;;  %v160_v24 = vld [vmem:[#allocation3 + $0x3b0] sm:$0xff] }
  0x66   :  { %505 = vmatpush3.msra.mxu0 %v66_v25  ;;  %319 = vmatprep.subr.mxu1 %v165_v22  ;;  %v159_v25 = vld [vmem:[#allocation3 + $0x3a8] sm:$0xff] }
  0x67   :  { %506 = vmatprep.subr.mxu0 %v141_v26  ;;  %320 = vmatpush2.msra.mxu1 %v164_v23  ;;  %v155_v26 = vld [vmem:[#allocation3 + $0x388] sm:$0xff] }
  0x68   :  { %507 = vmatpush3.msra.mxu0 %v61_v27  ;;  %321 = vmatprep.subr.mxu1 %v160_v24  ;;  %v154_v27 = vld [vmem:[#allocation3 + $0x380] sm:$0xff] }
  0x69   :  { %508 = vmatprep.subr.mxu0 %v136_v28  ;;  %322 = vmatpush2.msra.mxu1 %v159_v25  ;;  %v150_v28 = vld [vmem:[#allocation3 + $0x360] sm:$0xff] }
  0x6a   :  { %509 = vmatpush3.msra.mxu0 %v56_v29  ;;  %323 = vmatprep.subr.mxu1 %v155_v26  ;;  %v149_v29 = vld [vmem:[#allocation3 + $0x358] sm:$0xff] }
  0x6b   :  { %510 = vmatprep.subr.mxu0 %v131_v30  ;;  %324 = vmatpush2.msra.mxu1 %v154_v27  ;;  %v145_v30 = vld [vmem:[#allocation3 + $0x338] sm:$0xff] }
  0x6c   :  { %511 = vmatpush3.msra.mxu0 %v51_v31  ;;  %325 = vmatprep.subr.mxu1 %v150_v28  ;;  %v144_v31 = vld [vmem:[#allocation3 + $0x330] sm:$0xff] }
  0x6d   :  { %512 = vmatprep.subr.mxu0 %v126_v32  ;;  %326 = vmatpush2.msra.mxu1 %v149_v29  ;;  %v140_v32 = vld [vmem:[#allocation3 + $0x310] sm:$0xff] }
  0x6e   :  { %513 = vmatpush3.msra.mxu0 %v46_v33  ;;  %327 = vmatprep.subr.mxu1 %v145_v30  ;;  %v139_v33 = vld [vmem:[#allocation3 + $0x308] sm:$0xff] }
  0x6f   :  { %409 = vmatmul.mubr.f32.vlgmr.msra.gmra.mxu0 %v614_v1  ;;  %328 = vmatpush2.msra.mxu1 %v144_v31 }
  0x70   :  { %329 = vmatprep.subr.mxu1 %v140_v32  ;;  %527 = vset.pattern.permute.xlu0 %v581_v47 }
  0x71   :  { %330 = vmatpush2.msra.mxu1 %v139_v33  ;;  %525 = vset.pattern.permute.xlu1 %v582_v48 }
 0x10f   :  { %v619_v34 = vpop.f32.mrf.mxu0 }
 0x111   :  { %v621_v35 = vpop.f32.mrf.mxu0 }
 0x12f   :  { %v514_v36 = vpop.f32.mrf.mxu0 }
 0x131   :  { %v515_v37 = vpop.f32.mrf.mxu0 }
 0x132   :  { %v623_v38 = vadd.f32 %v515_v37, %v514_v36  ;;  %v135_v36 = vld [vmem:[#allocation3 + $0x2e8] sm:$0xff]  ;;  %v134_v37 = vld [vmem:[#allocation3 + $0x2e0] sm:$0xff] }
 0x133   :  { %331 = vmatprep.subr.mxu1 %v135_v36 }
 0x134   :  { %432 = vmax.xlane.f32.xlu0 %v623_v38  ;;  %332 = vmatpush2.msra.mxu1 %v134_v37 }
 0x135   :  { %333 = vmatprep.subr.mxu1 %v130_v39 }
 0x136   :  { %334 = vmatpush2.msra.mxu1 %v129_v40 }
 0x137   :  { %335 = vmatprep.subr.mxu1 %v125_v41 }
 0x138   :  { %336 = vmatpush2.msra.mxu1 %v124_v42 }
 0x139   :  { %338 = vmatmul.mubr.f32.vlgmr.msra.gmra.mxu1 %v614_v1  ;;  %v584_v1 = vmov 3  }
 0x1bd   :  { %v433_v43 = vpop.xlane.xlu0 %432 }
 0x1be   :  { %v434_v44 = vsub.f32 %v623_v38, %v433_v43 }
 0x1c0   :  { %v435_v45 = vmul.f32 1.442695, %v434_v44 }
 0x1c2   :  { %530 = vpow2.f32 %v435_v45 }
 0x1cf   :  { %v531_v46 = vpop.eup %530 }
 0x1d0   :  { %437 = vadd.xlane.f32.xlu0 %v531_v46 }
 0x1f9   :  { %v339_v53 = vpop.f32.mrf.mxu1 }
 0x1fb   :  { %v341_v60 = vpop.f32.mrf.mxu1 }
 0x259   :  { %v438_v49 = vpop.xlane.xlu0 %437 }
 0x25a   :  { %532 = vrcp.f32 %v438_v49 }
 0x267   :  { %v533_v50 = vpop.eup %532 }
 0x268   :  { %v440_v51 = vmul.f32 %v533_v50, %v531_v46 }
 0x26a   :  { %455 = vperm.xlu0 %527, %v440_v51   ;;  %443 = vperm.xlu1 %525, %v440_v51  }
 0x26e   :  { %526 = vset.pattern.permute.xlu1 %v583_v52  ;;  %529 = vset.pattern.permute.xlu0 %v584_v1 }
 0x26f   :  { %449 = vperm.xlu1 %526, %v440_v51  }
 0x273   :  { %528 = vset.pattern.permute.xlu1 %v584_v1 }
 0x274   :  { %461 = vperm.xlu1 %528, %v440_v51  }
 0x2e5   :  { %v444_v38 = vpop.permute.xlu1 %443  ;;  %v456_v54 = vpop.permute.xlu0 %455 }
 0x2e6   :  { %v446_v56 = vmul.f32 %v444_v38, %v619_v34  ;;  %v458_v58 = vmul.f32 %v456_v54, %v339_v53 }
 0x2ea   :  { %v450_v55 = vpop.permute.xlu1 %449 }
 0x2eb   :  { %v452_v57 = vmul.f32 %v450_v55, %v621_v35 }
 0x2ed   :  { %v453_v59 = vadd.f32 %v452_v57, %v446_v56 }
 0x2ef   :  { %v459_v61 = vadd.f32 %v458_v58, %v453_v59  ;;  %v462_v62 = vpop.permute.xlu1 %461 }
 0x2f0   :  { %v464_v63 = vmul.f32 %v462_v62, %v341_v60 }
 0x2f2   :  { %v465_v0 = vadd.f32 %v464_v63, %v459_v61 }
 0x2f4   :  { %466 = vst [vmem:[#allocation6] sm:$0xff] %v465_v0 }
 0x2f5   :  { %565 = shalt.err (!%p562_p9)
}
 0x2f6   :  { %476 = dma.vmem_to_hbm [thread:$0]  %s474_s19, 128, %s635_s2, [#allocation5]  }
 0x2f7   :  { %576 = dma.done.wait [#allocation5], 128  }
 0x2f8   :  { %577 = vsyncadd [#allocation5], 4294967168 }
 0x2f9   :  { %480 = vsyncpa [#allocation4], 1 }
 0x2fa   :  { %481 = vsyncpa [#allocation5], 1 }

</bundles_post_ra>
